<compile_context>
chip_gen: v5e
topology: v5e:2x2
jax: 0.10.0
libtpu: 0.0.40
codegen_flags: <defaults>
</compile_context>

<pallas_src>
import jax
import jax.numpy as jnp
from jax import lax
from jax.experimental import pallas as pl
from jax.experimental.pallas import tpu as pltpu

# ---- model / problem sizes (small, consistent with the module's forward) ----
N, CIN, H, W = 2, 4, 16, 16      # input: (N, CIN, H, W) in NCHW
COUT = 32                        # backbone conv output channels
K = 3                            # conv kernel size (padding=1 -> SAME)
GRID = 6
OUT = 2 * (GRID + 1)             # grid_predictor output features
HW = H * W


def grid_detection_kernel(patch_ref, wc_ref, bc_ref, pool_ref, wl_ref, bl_ref,
                          o_ref):
    """Fused backbone + grid_predictor, all samples in one invocation.

    Channel-major ("transposed") layout: long N*H*W axis sits on lanes.

    patch_ref: (K*K*CIN, N*H*W)  im2col patches (lane-dense)
    wc_ref   : (COUT, K*K*CIN)   conv weights for im2col matmul
    bc_ref   : (COUT, 1)         conv bias (lane-broadcast column)
    pool_ref : (N*H*W, N)        per-sample averaging matrix (1/HW blocks)
    wl_ref   : (OUT, COUT)       linear weights (transposed)
    bl_ref   : (OUT, 1)          linear bias (column)
    o_ref    : (OUT, N)          output logits, transposed (wrapper flips it)
    """
    # Convolution as a single (COUT, 36) x (36, N*H*W) MXU matmul.
    conv = jnp.dot(wc_ref[...], patch_ref[...],
                   preferred_element_type=jnp.float32)
    # Bias + ReLU on a fully lane-dense (COUT, N*H*W) tile.
    feat = jnp.maximum(conv + bc_ref[...], 0.0)

    # Global average pool via MXU: (COUT, N*H*W) x (N*H*W, N) -> (COUT, N).
    pooled = jnp.dot(feat, pool_ref[...],
                     preferred_element_type=jnp.float32)

    # Final linear layer: (OUT, COUT) x (COUT, N) + bias column.
    logits = jnp.dot(wl_ref[...], pooled,
                     preferred_element_type=jnp.float32) + bl_ref[...]
    o_ref[...] = logits.astype(o_ref.dtype)          # one (OUT, N) store


def grid_detection(x_nchw, wc, bc, wl, bl):
    """Wrapper: NCHW -> NHWC, lane-dense im2col, one pallas_call, tiny .T."""
    n = x_nchw.shape[0]

    # NCHW -> NHWC, SAME zero-padding folded into im2col patch construction.
    x = jnp.transpose(x_nchw, (0, 2, 3, 1)).astype(jnp.float32)
    x_pad = jnp.pad(x, ((0, 0), (1, 1), (1, 1), (0, 0)))

    # im2col, channel-major: rows index (kh, kw, ci), columns index (n, h, w).
    # (K*K, N, H, W, CIN) -> (K*K, CIN, N, H, W) -> (K*K*CIN, N*H*W)
    taps = [x_pad[:, kh:kh + H, kw:kw + W, :]
            for kh in range(K) for kw in range(K)]
    patches_t = jnp.transpose(jnp.stack(taps, axis=0),
                              (0, 4, 1, 2, 3)).reshape(K * K * CIN, n * HW)

    # Conv weights (HWIO) flattened then transposed: (COUT, K*K*CIN).
    wc_t = wc.reshape(K * K * CIN, COUT).T
    bc_col = bc.reshape(COUT, 1)

    # Constant per-sample averaging matrix: pool_t[i*HW + j, i] = 1/HW.
    col_sample = jnp.repeat(jnp.arange(n), HW)                       # (n*HW,)
    pool_t = (col_sample[:, None] == jnp.arange(n)[None, :])
    pool_t = pool_t.astype(jnp.float32) / float(HW)                  # (n*HW, n)

    wl_t = wl.T                                                      # (OUT, COUT)
    bl_col = bl.reshape(OUT, 1)

    vmem = pl.BlockSpec(memory_space=pltpu.MemorySpace.VMEM)
    out_t = pl.pallas_call(
        grid_detection_kernel,
        out_shape=jax.ShapeDtypeStruct((OUT, n), jnp.float32),
        in_specs=[vmem] * 6,
        out_specs=vmem,
    )(patches_t, wc_t, bc_col, pool_t, wl_t, bl_col)
    return out_t.T                                                   # (N, OUT)


def reference(x_nchw, wc, bc, wl, bl):
    """Pure-JAX reference of the same forward pass."""
    x = jnp.transpose(x_nchw, (0, 2, 3, 1)).astype(jnp.float32)
    y = lax.conv_general_dilated(
        x, wc, window_strides=(1, 1), padding="SAME",
        dimension_numbers=("NHWC", "HWIO", "NHWC"))
    y = jnp.maximum(y + bc.reshape(1, 1, 1, COUT), 0.0)
    pooled = jnp.mean(y, axis=(1, 2))
    return pooled @ wl + bl.reshape(1, OUT)


if __name__ == "__main__":
    key = jax.random.PRNGKey(0)
    kx, kwc, kbc, kwl, kbl = jax.random.split(key, 5)

    x = jax.random.normal(kx, (N, CIN, H, W), dtype=jnp.float32)
    # Deterministic synthetic parameters (no checkpoint loading).
    wc = 0.1 * jax.random.normal(kwc, (K, K, CIN, COUT), dtype=jnp.float32)
    bc = 0.1 * jax.random.normal(kbc, (1, COUT), dtype=jnp.float32)
    wl = 0.1 * jax.random.normal(kwl, (COUT, OUT), dtype=jnp.float32)
    bl = 0.1 * jax.random.normal(kbl, (1, OUT), dtype=jnp.float32)

    out = jax.block_until_ready(grid_detection(x, wc, bc, wl, bl))
    ref = jax.block_until_ready(reference(x, wc, bc, wl, bl))

    assert out.shape == (N, OUT), out.shape
    assert jnp.allclose(out, ref, atol=1e-4, rtol=1e-4), (
        float(jnp.max(jnp.abs(out - ref))))
    print("KERNEL_OK")
</pallas_src>

<mosaic_0001>
module attributes {stable_mosaic.version = 11 : i64} {
  func.func @grid_detection_kernel(%arg0: memref<36x512xf32, #tpu.memory_space<vmem>>, %arg1: memref<32x36xf32, #tpu.memory_space<vmem>>, %arg2: memref<32x1xf32, #tpu.memory_space<vmem>>, %arg3: memref<512x2xf32, #tpu.memory_space<vmem>>, %arg4: memref<14x32xf32, #tpu.memory_space<vmem>>, %arg5: memref<14x1xf32, #tpu.memory_space<vmem>>, %arg6: memref<14x2xf32, #tpu.memory_space<vmem>>) attributes {dimension_semantics = [], scalar_prefetch = 0 : i64, scratch_operands = 0 : i64, tpu.core_type = #tpu.core_type<tc>} {
    %c0 = arith.constant 0 : index
    %c0_0 = arith.constant 0 : index
    %0 = vector.load %arg1[%c0, %c0_0] : memref<32x36xf32, #tpu.memory_space<vmem>>, vector<32x36xf32>
    %c0_1 = arith.constant 0 : index
    %c0_2 = arith.constant 0 : index
    %1 = vector.load %arg0[%c0_1, %c0_2] : memref<36x512xf32, #tpu.memory_space<vmem>>, vector<36x512xf32>
    %cst = arith.constant dense<0.000000e+00> : vector<32x512xf32>
    %2 = tpu.matmul %0, %1, %cst {dimension_numbers = #tpu.dot_dimension_numbers<[1], [0], [0], [1], [0, 0, 1, 1], [], []>} : vector<32x36xf32>, vector<36x512xf32>, vector<32x512xf32> -> vector<32x512xf32>
    %c0_3 = arith.constant 0 : index
    %c0_4 = arith.constant 0 : index
    %3 = vector.load %arg2[%c0_3, %c0_4] : memref<32x1xf32, #tpu.memory_space<vmem>>, vector<32x1xf32>
    %4 = vector.broadcast %3 : vector<32x1xf32> to vector<32x512xf32>
    %5 = arith.addf %2, %4 : vector<32x512xf32>
    %cst_5 = arith.constant 0.000000e+00 : f32
    %6 = vector.broadcast %cst_5 : f32 to vector<32x512xf32>
    %7 = arith.maximumf %5, %6 : vector<32x512xf32>
    %c0_6 = arith.constant 0 : index
    %c0_7 = arith.constant 0 : index
    %8 = vector.load %arg3[%c0_6, %c0_7] : memref<512x2xf32, #tpu.memory_space<vmem>>, vector<512x2xf32>
    %cst_8 = arith.constant dense<0.000000e+00> : vector<32x2xf32>
    %9 = tpu.matmul %7, %8, %cst_8 {dimension_numbers = #tpu.dot_dimension_numbers<[1], [0], [0], [1], [0, 0, 1, 1], [], []>} : vector<32x512xf32>, vector<512x2xf32>, vector<32x2xf32> -> vector<32x2xf32>
    %c0_9 = arith.constant 0 : index
    %c0_10 = arith.constant 0 : index
    %10 = vector.load %arg4[%c0_9, %c0_10] : memref<14x32xf32, #tpu.memory_space<vmem>>, vector<14x32xf32>
    %cst_11 = arith.constant dense<0.000000e+00> : vector<14x2xf32>
    %11 = tpu.matmul %10, %9, %cst_11 {dimension_numbers = #tpu.dot_dimension_numbers<[1], [0], [0], [1], [0, 0, 1, 1], [], []>} : vector<14x32xf32>, vector<32x2xf32>, vector<14x2xf32> -> vector<14x2xf32>
    %c0_12 = arith.constant 0 : index
    %c0_13 = arith.constant 0 : index
    %12 = vector.load %arg5[%c0_12, %c0_13] : memref<14x1xf32, #tpu.memory_space<vmem>>, vector<14x1xf32>
    %13 = vector.broadcast %12 : vector<14x1xf32> to vector<14x2xf32>
    %14 = arith.addf %11, %13 : vector<14x2xf32>
    %c0_14 = arith.constant 0 : index
    %c0_15 = arith.constant 0 : index
    %15 = vector.load %arg6[%c0_14, %c0_15] : memref<14x2xf32, #tpu.memory_space<vmem>>, vector<14x2xf32>
    tpu.vector_store %arg6[%c0_14, %c0_15], %14 {strides = array<i32>} : memref<14x2xf32, #tpu.memory_space<vmem>>, vector<14x2xf32>,
    return
  }
}

</mosaic_0001>

<bundles_post_ra>
// kernel: tpu_custom_call.1
= control target key start
LH: loop header
LB: loop body
LE: loop exit
PB: predicated region body
PF: predicated region fallthrough
CT: control target
= control target key end

     0   :  { %vm84_vm0 = vcmask 1043456   ;;  %v491_v3 = vmov 0   ;;  %vm71_vm1 = vcmask 293888   ;;  %vm423_vm2 = vcmask 261120   ;;  %s840_s0 = inlined_call_operand.vmem [shape: f32[36,512], index: 0, kind: input, shape index: {}]   ;;  %s841_s1 = inlined_call_operand.vmem [shape: f32[32,36], index: 1, kind: input, shape index: {}]   ;;  %s842_s2 = inlined_call_operand.vmem [shape: f32[32,1], index: 2, kind: input, shape index: {}]   ;;  %s843_s3 = inlined_call_operand.vmem [shape: f32[512,2], index: 3, kind: input, shape index: {}]   ;;  %s844_s5 = inlined_call_operand.vmem [shape: f32[14,1], index: 5, kind: input, shape index: {}]   ;;  %s845_s4 = inlined_call_operand.vmem [shape: f32[14,32], index: 4, kind: input, shape index: {}]   ;;  %s846_s6 = inlined_call_operand.vmem [shape: f32[14,2], index: 6, kind: output, shape index: {}]  }
   0x1   :  { %v43_v0 = vld [vmem:[%s840_s0 + $0x80] sm:$0xf]  ;;  %v44_v1 = vld [vmem:[%s840_s0 + $0x88] sm:$0xf]  ;;  %v45_v2 = vld [vmem:[%s840_s0 + $0x90] sm:$0xf]  ;;  %488 = vset.pattern.permute.xlu0 %v491_v3  ;;  %489 = vset.pattern.permute.xlu1 %v491_v3 }
   0x2   :  { %461 = vmatpush.msk.msra.mxu0 %vm84_vm0, %v43_v0  ;;  %466 = vmatpush.msk.msra.mxu1 %vm84_vm0, %v44_v1  ;;  %v46_v4 = vld [vmem:[%s840_s0 + $0x98] sm:$0xf]  ;;  %v39_v5 = vld [vmem:[%s840_s0 + $0x60] sm:$0xff]  ;;  %v40_v6 = vld [vmem:[%s840_s0 + $0x68] sm:$0xff]  ;;  %vm453_vm3 = vcmask 15360   ;;  %vm455_vm4 = vcmask 13312  }
   0x3   :  { %471 = vmatpush.msk.msra.mxu2 %vm84_vm0, %v45_v2  ;;  %476 = vmatpush.msk.msra.mxu3 %vm84_vm0, %v46_v4  ;;  %v41_v7 = vld [vmem:[%s840_s0 + $0x70] sm:$0xff]  ;;  %v42_v8 = vld [vmem:[%s840_s0 + $0x78] sm:$0xff]  ;;  %v35_v9 = vld [vmem:[%s840_s0 + $0x40] sm:$0xff] }
   0x4   :  { %109 = vmatpush.msra.mxu0 %v39_v5  ;;  %138 = vmatpush.msra.mxu1 %v40_v6  ;;  %v36_v10 = vld [vmem:[%s840_s0 + $0x48] sm:$0xff]  ;;  %v37_v11 = vld [vmem:[%s840_s0 + $0x50] sm:$0xff]  ;;  %v38_v12 = vld [vmem:[%s840_s0 + $0x58] sm:$0xff] }
   0x5   :  { %167 = vmatpush.msra.mxu2 %v41_v7  ;;  %196 = vmatpush.msra.mxu3 %v42_v8  ;;  %v31_v13 = vld [vmem:[%s840_s0 + $0x20] sm:$0xff]  ;;  %v32_v14 = vld [vmem:[%s840_s0 + $0x28] sm:$0xff]  ;;  %v33_v15 = vld [vmem:[%s840_s0 + $0x30] sm:$0xff] }
   0x6   :  { %110 = vmatpush.msra.mxu0 %v35_v9  ;;  %139 = vmatpush.msra.mxu1 %v36_v10  ;;  %v34_v16 = vld [vmem:[%s840_s0 + $0x38] sm:$0xff]  ;;  %v27_v17 = vld [vmem:[%s840_s0] sm:$0xff]  ;;  %v28_v18 = vld [vmem:[%s840_s0 + $0x8] sm:$0xff] }
   0x7   :  { %168 = vmatpush.msra.mxu2 %v37_v11  ;;  %197 = vmatpush.msra.mxu3 %v38_v12  ;;  %v29_v19 = vld [vmem:[%s840_s0 + $0x10] sm:$0xff]  ;;  %v30_v20 = vld [vmem:[%s840_s0 + $0x18] sm:$0xff]  ;;  %v23_v21 = vld [vmem:[%s841_s1] sm:$0xff] }
   0x8   :  { %111 = vmatpush.msra.mxu0 %v31_v13  ;;  %140 = vmatpush.msra.mxu1 %v32_v14  ;;  %v47_v22 = vld [vmem:[%s842_s2] sm:$0xff]  ;;  %v49_v23 = vld [vmem:[%s842_s2 + $0x10] sm:$0xff]  ;;  %v244_v24 = vld [vmem:[%s843_s3 + $0x78] sm:$0xff] }
   0x9   :  { %169 = vmatpush.msra.mxu2 %v33_v15  ;;  %198 = vmatpush.msra.mxu3 %v34_v16  ;;  %v260_v25 = vld [vmem:[%s843_s3 + $0xf8] sm:$0xff]  ;;  %v243_v28 = vld [vmem:[%s843_s3 + $0x70] sm:$0xff]  ;;  %v242_v32 = vld [vmem:[%s843_s3 + $0x68] sm:$0xff] }
   0xa   :  { %112 = vmatpush.msra.mxu0 %v27_v17  ;;  %141 = vmatpush.msra.mxu1 %v28_v18  ;;  %v276_v26 = vld [vmem:[%s843_s3 + $0x178] sm:$0xff]  ;;  %v259_v29 = vld [vmem:[%s843_s3 + $0xf0] sm:$0xff]  ;;  %v258_v33 = vld [vmem:[%s843_s3 + $0xe8] sm:$0xff] }
   0xb   :  { %170 = vmatpush.msra.mxu2 %v29_v19  ;;  %199 = vmatpush.msra.mxu3 %v30_v20  ;;  %v292_v27 = vld [vmem:[%s843_s3 + $0x1f8] sm:$0xff]  ;;  %v275_v30 = vld [vmem:[%s843_s3 + $0x170] sm:$0xff]  ;;  %v24_v34 = vld [vmem:[%s841_s1 + $0x8] sm:$0xff] }
   0xc   :  { %462 = vmatmul.msk.f32.vlgmr.msra.gmra.mxu0 %vm71_vm1, %v23_v21  ;;  %467 = vmatmul.msk.f32.vlgmr.msra.gmra.mxu1 %vm71_vm1, %v23_v21  ;;  %v291_v31 = vld [vmem:[%s843_s3 + $0x1f0] sm:$0xff]  ;;  %v48_v35 = vld [vmem:[%s842_s2 + $0x8] sm:$0xff]  ;;  %v50_v36 = vld [vmem:[%s842_s2 + $0x18] sm:$0xff] }
   0xd   :  { %472 = vmatmul.msk.f32.vlgmr.msra.gmra.mxu2 %vm71_vm1, %v23_v21  ;;  %477 = vmatmul.msk.f32.vlgmr.msra.gmra.mxu3 %vm71_vm1, %v23_v21  ;;  %v241_v37 = vld [vmem:[%s843_s3 + $0x60] sm:$0xff]  ;;  %v274_v39 = vld [vmem:[%s843_s3 + $0x168] sm:$0xff]  ;;  %v240_v41 = vld [vmem:[%s843_s3 + $0x58] sm:$0xff] }
   0xe   :  { %53 = vperm.xlu0 %488, %v47_v22   ;;  %63 = vperm.xlu1 %489, %v49_v23   ;;  %v257_v38 = vld [vmem:[%s843_s3 + $0xe0] sm:$0xff]  ;;  %v290_v40 = vld [vmem:[%s843_s3 + $0x1e8] sm:$0xff]  ;;  %v256_v42 = vld [vmem:[%s843_s3 + $0xd8] sm:$0xff] }
   0xf   :  { %293 = vmatpush.msrb.mxu0 %v244_v24  ;;  %322 = vmatpush.msrb.mxu1 %v260_v25  ;;  %v273_v43 = vld [vmem:[%s843_s3 + $0x160] sm:$0xff]  ;;  %v239_v45 = vld [vmem:[%s843_s3 + $0x50] sm:$0xff]  ;;  %v238_v48 = vld [vmem:[%s843_s3 + $0x48] sm:$0xff] }
  0x10   :  { %351 = vmatpush.msrb.mxu2 %v276_v26  ;;  %380 = vmatpush.msrb.mxu3 %v292_v27  ;;  %v289_v44 = vld [vmem:[%s843_s3 + $0x1e0] sm:$0xff]  ;;  %v255_v46 = vld [vmem:[%s843_s3 + $0xd0] sm:$0xff]  ;;  %v254_v49 = vld [vmem:[%s843_s3 + $0xc8] sm:$0xff] }
  0x11   :  { %294 = vmatpush.msrb.mxu0 %v243_v28  ;;  %323 = vmatpush.msrb.mxu1 %v259_v29  ;;  %v25_v47 = vld [vmem:[%s841_s1 + $0x10] sm:$0xff]  ;;  %v272_v50 = vld [vmem:[%s843_s3 + $0x158] sm:$0xff]  ;;  %v237_v52 = vld [vmem:[%s843_s3 + $0x40] sm:$0xff] }
  0x12   :  { %352 = vmatpush.msrb.mxu2 %v275_v30  ;;  %381 = vmatpush.msrb.mxu3 %v291_v31  ;;  %v288_v51 = vld [vmem:[%s843_s3 + $0x1d8] sm:$0xff]  ;;  %v253_v53 = vld [vmem:[%s843_s3 + $0xc0] sm:$0xff]  ;;  %v271_v54 = vld [vmem:[%s843_s3 + $0x150] sm:$0xff] }
  0x13   :  { %295 = vmatpush.msrb.mxu0 %v242_v32  ;;  %324 = vmatpush.msrb.mxu1 %v258_v33  ;;  %v287_v55 = vld [vmem:[%s843_s3 + $0x1d0] sm:$0xff]  ;;  %v236_v56 = vld [vmem:[%s843_s3 + $0x38] sm:$0xff]  ;;  %v270_v58 = vld [vmem:[%s843_s3 + $0x148] sm:$0xff] }
  0x14   :  { %463 = vmatmul.msk.f32.gmra.mxu0 %vm71_vm1, %v24_v34  ;;  %468 = vmatmul.msk.f32.gmra.mxu1 %vm71_vm1, %v24_v34  ;;  %v252_v57 = vld [vmem:[%s843_s3 + $0xb8] sm:$0xff]  ;;  %v286_v59 = vld [vmem:[%s843_s3 + $0x1c8] sm:$0xff]  ;;  %v235_v61 = vld [vmem:[%s843_s3 + $0x30] sm:$0xff] }
  0x15   :  { %473 = vmatmul.msk.f32.gmra.mxu2 %vm71_vm1, %v24_v34  ;;  %478 = vmatmul.msk.f32.gmra.mxu3 %vm71_vm1, %v24_v34  ;;  %v26_v60 = vld [vmem:[%s841_s1 + $0x18] sm:$0xff]  ;;  %v251_v62 = vld [vmem:[%s843_s3 + $0xb0] sm:$0xff]  ;;  %v269_v63 = vld [vmem:[%s843_s3 + $0x140] sm:$0xff] }
  0x16   :  { %58 = vperm.xlu0 %488, %v48_v35   ;;  %68 = vperm.xlu1 %489, %v50_v36   ;;  %v285_v0 = vld [vmem:[%s843_s3 + $0x1c0] sm:$0xff]  ;;  %v234_v1 = vld [vmem:[%s843_s3 + $0x28] sm:$0xff]  ;;  %v268_v4 = vld [vmem:[%s843_s3 + $0x138] sm:$0xff] }
  0x17   :  { %296 = vmatpush.msrb.mxu0 %v241_v37  ;;  %325 = vmatpush.msrb.mxu1 %v257_v38  ;;  %v250_v2 = vld [vmem:[%s843_s3 + $0xa8] sm:$0xff]  ;;  %v284_v5 = vld [vmem:[%s843_s3 + $0x1b8] sm:$0xff]  ;;  %v233_v6 = vld [vmem:[%s843_s3 + $0x20] sm:$0xff] }
  0x18   :  { %353 = vmatpush.msrb.mxu2 %v274_v39  ;;  %382 = vmatpush.msrb.mxu3 %v290_v40  ;;  %v249_v7 = vld [vmem:[%s843_s3 + $0xa0] sm:$0xff]  ;;  %v232_v8 = vld [vmem:[%s843_s3 + $0x18] sm:$0xff]  ;;  %v267_v10 = vld [vmem:[%s843_s3 + $0x130] sm:$0xff] }
  0x19   :  { %297 = vmatpush.msrb.mxu0 %v240_v41  ;;  %326 = vmatpush.msrb.mxu1 %v256_v42  ;;  %v248_v9 = vld [vmem:[%s843_s3 + $0x98] sm:$0xff]  ;;  %v283_v11 = vld [vmem:[%s843_s3 + $0x1b0] sm:$0xff]  ;;  %v266_v13 = vld [vmem:[%s843_s3 + $0x128] sm:$0xff] }
  0x1a   :  { %354 = vmatpush.msrb.mxu2 %v273_v43  ;;  %383 = vmatpush.msrb.mxu3 %v289_v44  ;;  %v247_v12 = vld [vmem:[%s843_s3 + $0x90] sm:$0xff]  ;;  %v282_v14 = vld [vmem:[%s843_s3 + $0x1a8] sm:$0xff]  ;;  %v265_v17 = vld [vmem:[%s843_s3 + $0x120] sm:$0xff] }
  0x1b   :  { %298 = vmatpush.msrb.mxu0 %v239_v45  ;;  %327 = vmatpush.msrb.mxu1 %v255_v46  ;;  %v230_v15 = vld [vmem:[%s843_s3 + $0x8] sm:$0xff]  ;;  %v281_v18 = vld [vmem:[%s843_s3 + $0x1a0] sm:$0xff]  ;;  %v264_v21 = vld [vmem:[%s843_s3 + $0x118] sm:$0xff] }
  0x1c   :  { %464 = vmatmul.msk.f32.gmra.mxu0 %vm71_vm1, %v25_v47  ;;  %469 = vmatmul.msk.f32.gmra.mxu1 %vm71_vm1, %v25_v47  ;;  %v246_v16 = vld [vmem:[%s843_s3 + $0x88] sm:$0xff]  ;;  %v229_v19 = vld [vmem:[%s843_s3] sm:$0xff]  ;;  %v280_v22 = vld [vmem:[%s843_s3 + $0x198] sm:$0xff] }
  0x1d   :  { %474 = vmatmul.msk.f32.gmra.mxu2 %vm71_vm1, %v25_v47  ;;  %479 = vmatmul.msk.f32.gmra.mxu3 %vm71_vm1, %v25_v47  ;;  %v245_v20 = vld [vmem:[%s843_s3 + $0x80] sm:$0xff]  ;;  %v263_v23 = vld [vmem:[%s843_s3 + $0x110] sm:$0xff]  ;;  %v262_v25 = vld [vmem:[%s843_s3 + $0x108] sm:$0xff] }
  0x1e   :  { %299 = vmatpush.msrb.mxu0 %v238_v48  ;;  %328 = vmatpush.msrb.mxu1 %v254_v49  ;;  %v279_v24 = vld [vmem:[%s843_s3 + $0x190] sm:$0xff]  ;;  %v278_v26 = vld [vmem:[%s843_s3 + $0x188] sm:$0xff]  ;;  %v261_v27 = vld [vmem:[%s843_s3 + $0x100] sm:$0xff] }
  0x1f   :  { %355 = vmatpush.msrb.mxu2 %v272_v50  ;;  %384 = vmatpush.msrb.mxu3 %v288_v51  ;;  %v277_v28 = vld [vmem:[%s843_s3 + $0x180] sm:$0xff] }
  0x20   :  { %300 = vmatpush.msrb.mxu0 %v237_v52  ;;  %329 = vmatpush.msrb.mxu1 %v253_v53 }
  0x21   :  { %356 = vmatpush.msrb.mxu2 %v271_v54  ;;  %385 = vmatpush.msrb.mxu3 %v287_v55 }
  0x22   :  { %301 = vmatpush.msrb.mxu0 %v236_v56  ;;  %330 = vmatpush.msrb.mxu1 %v252_v57 }
  0x23   :  { %357 = vmatpush.msrb.mxu2 %v270_v58  ;;  %386 = vmatpush.msrb.mxu3 %v286_v59 }
  0x24   :  { %465 = vmatmul.msk.f32.gmra.mxu0 %vm71_vm1, %v26_v60  ;;  %470 = vmatmul.msk.f32.gmra.mxu1 %vm71_vm1, %v26_v60 }
  0x25   :  { %475 = vmatmul.msk.f32.gmra.mxu2 %vm71_vm1, %v26_v60  ;;  %480 = vmatmul.msk.f32.gmra.mxu3 %vm71_vm1, %v26_v60 }
  0x26   :  { %302 = vmatpush.msrb.mxu0 %v235_v61  ;;  %331 = vmatpush.msrb.mxu1 %v251_v62 }
  0x27   :  { %358 = vmatpush.msrb.mxu2 %v269_v63  ;;  %387 = vmatpush.msrb.mxu3 %v285_v0 }
  0x28   :  { %303 = vmatpush.msrb.mxu0 %v234_v1  ;;  %332 = vmatpush.msrb.mxu1 %v250_v2 }
  0x29   :  { %359 = vmatpush.msrb.mxu2 %v268_v4  ;;  %388 = vmatpush.msrb.mxu3 %v284_v5 }
  0x2a   :  { %304 = vmatpush.msrb.mxu0 %v233_v6  ;;  %333 = vmatpush.msrb.mxu1 %v249_v7 }
  0x2b   :  { %490 = vset.pattern.permute.xlu2 %v491_v3  ;;  %360 = vmatpush.msrb.mxu2 %v267_v10  ;;  %v231_v3 = vld [vmem:[%s843_s3 + $0x10] sm:$0xff] }
  0x2c   :  { %305 = vmatpush.msrb.mxu0 %v232_v8  ;;  %334 = vmatpush.msrb.mxu1 %v248_v9 }
  0x2d   :  { %389 = vmatpush.msrb.mxu3 %v283_v11  ;;  %361 = vmatpush.msrb.mxu2 %v266_v13 }
  0x2e   :  { %306 = vmatpush.msrb.mxu0 %v231_v3  ;;  %335 = vmatpush.msrb.mxu1 %v247_v12 }
  0x2f   :  { %390 = vmatpush.msrb.mxu3 %v282_v14  ;;  %362 = vmatpush.msrb.mxu2 %v265_v17 }
  0x30   :  { %307 = vmatpush.msrb.mxu0 %v230_v15  ;;  %336 = vmatpush.msrb.mxu1 %v246_v16 }
  0x31   :  { %391 = vmatpush.msrb.mxu3 %v281_v18  ;;  %363 = vmatpush.msrb.mxu2 %v264_v21 }
  0x32   :  { %308 = vmatpush.msrb.mxu0 %v229_v19  ;;  %337 = vmatpush.msrb.mxu1 %v245_v20 }
  0x33   :  { %392 = vmatpush.msrb.mxu3 %v280_v22  ;;  %364 = vmatpush.msrb.mxu2 %v263_v23  ;;  %v411_v23 = vld [vmem:[%s844_s5] sm:$0xff] }
  0x34   :  { %415 = vperm.xlu2 %490, %v411_v23  }
  0x35   :  { %393 = vmatpush.msrb.mxu3 %v279_v24  ;;  %365 = vmatpush.msrb.mxu2 %v262_v25 }
  0x37   :  { %394 = vmatpush.msrb.mxu3 %v278_v26  ;;  %366 = vmatpush.msrb.mxu2 %v261_v27 }
  0x39   :  { %395 = vmatpush.msrb.mxu3 %v277_v28  ;;  %v412_v28 = vld [vmem:[%s844_s5 + $0x8] sm:$0x3f] }
  0x3c   :  { %420 = vperm.xlu2 %490, %v412_v28  }
  0x80   :  { %v54_v29 = vpop.permute.xlu0 %53  ;;  %v64_v49 = vpop.permute.xlu1 %63 }
  0x88   :  { %v59_v36 = vpop.permute.xlu0 %58  ;;  %v69_v62 = vpop.permute.xlu1 %68 }
  0x89   :  { %v114_v30 = vpop.f32.mrf.mxu0  ;;  %v143_v31 = vpop.f32.mrf.mxu1 }
  0x8a   :  { %v115_v32 = vadd.f32 %v114_v30, %v54_v29  ;;  %v144_v33 = vadd.f32 %v143_v31, %v54_v29 }
  0x8c   :  { %v213_v34 = vmax.f32 %v115_v32, 0.0  ;;  %v214_v35 = vmax.f32 %v144_v33, 0.0 }
  0x8e   :  { %309 = vmatmul.f32.vlgmr.msrb.gmra.mxu0 %v213_v34  ;;  %338 = vmatmul.f32.vlgmr.msrb.gmra.mxu1 %v214_v35 }
  0x90   :  { %v172_v37 = vpop.f32.mrf.mxu2  ;;  %v201_v38 = vpop.f32.mrf.mxu3 }
  0x91   :  { %v173_v39 = vadd.f32 %v172_v37, %v54_v29  ;;  %v202_v40 = vadd.f32 %v201_v38, %v54_v29  ;;  %v117_v41 = vpop.f32.mrf.mxu0  ;;  %v146_v42 = vpop.f32.mrf.mxu1 }
  0x92   :  { %v118_v43 = vadd.f32 %v117_v41, %v59_v36  ;;  %v147_v44 = vadd.f32 %v146_v42, %v59_v36 }
  0x93   :  { %v215_v45 = vmax.f32 %v173_v39, 0.0  ;;  %v216_v46 = vmax.f32 %v202_v40, 0.0 }
  0x94   :  { %v217_v47 = vmax.f32 %v118_v43, 0.0  ;;  %v218_v48 = vmax.f32 %v147_v44, 0.0 }
  0x95   :  { %367 = vmatmul.f32.vlgmr.msrb.gmra.mxu2 %v215_v45  ;;  %396 = vmatmul.f32.vlgmr.msrb.gmra.mxu3 %v216_v46 }
  0x96   :  { %312 = vmatmul.f32.gmra.mxu0 %v217_v47  ;;  %341 = vmatmul.f32.gmra.mxu1 %v218_v48  ;;  %v409_v47 = vld [vmem:[%s845_s4] sm:$0xff]  ;;  %v410_v48 = vld [vmem:[%s845_s4 + $0x8] sm:$0x3f] }
  0x98   :  { %v175_v50 = vpop.f32.mrf.mxu2  ;;  %v204_v51 = vpop.f32.mrf.mxu3 }
  0x99   :  { %v176_v52 = vadd.f32 %v175_v50, %v59_v36  ;;  %v205_v53 = vadd.f32 %v204_v51, %v59_v36  ;;  %v120_v54 = vpop.f32.mrf.mxu0  ;;  %v149_v55 = vpop.f32.mrf.mxu1 }
  0x9a   :  { %v121_v56 = vadd.f32 %v120_v54, %v64_v49  ;;  %v150_v57 = vadd.f32 %v149_v55, %v64_v49 }
  0x9b   :  { %v219_v58 = vmax.f32 %v176_v52, 0.0  ;;  %v220_v59 = vmax.f32 %v205_v53, 0.0 }
  0x9c   :  { %v221_v60 = vmax.f32 %v121_v56, 0.0  ;;  %v222_v61 = vmax.f32 %v150_v57, 0.0 }
  0x9d   :  { %370 = vmatmul.f32.gmra.mxu2 %v219_v58  ;;  %399 = vmatmul.f32.gmra.mxu3 %v220_v59 }
  0x9e   :  { %315 = vmatmul.f32.gmra.mxu0 %v221_v60  ;;  %344 = vmatmul.f32.gmra.mxu1 %v222_v61 }
  0xa0   :  { %v178_v63 = vpop.f32.mrf.mxu2  ;;  %v207_v0 = vpop.f32.mrf.mxu3 }
  0xa1   :  { %v179_v1 = vadd.f32 %v178_v63, %v64_v49  ;;  %v208_v2 = vadd.f32 %v207_v0, %v64_v49  ;;  %v123_v4 = vpop.f32.mrf.mxu0  ;;  %v152_v5 = vpop.f32.mrf.mxu1 }
  0xa2   :  { %v124_v6 = vadd.f32 %v123_v4, %v69_v62  ;;  %v153_v7 = vadd.f32 %v152_v5, %v69_v62  ;;  %v416_v49 = vpop.permute.xlu2 %415 }
  0xa3   :  { %v223_v8 = vmax.f32 %v179_v1, 0.0  ;;  %v224_v9 = vmax.f32 %v208_v2, 0.0 }
  0xa4   :  { %v225_v10 = vmax.f32 %v124_v6, 0.0  ;;  %v226_v11 = vmax.f32 %v153_v7, 0.0 }
  0xa5   :  { %373 = vmatmul.f32.gmra.mxu2 %v223_v8  ;;  %402 = vmatmul.f32.gmra.mxu3 %v224_v9 }
  0xa6   :  { %318 = vmatmul.f32.gmra.mxu0 %v225_v10  ;;  %347 = vmatmul.f32.gmra.mxu1 %v226_v11 }
  0xa8   :  { %v181_v3 = vpop.f32.mrf.mxu2  ;;  %v210_v12 = vpop.f32.mrf.mxu3 }
  0xa9   :  { %v182_v13 = vadd.f32 %v181_v3, %v69_v62  ;;  %v211_v14 = vadd.f32 %v210_v12, %v69_v62 }
  0xaa   :  { %v421_v50 = vpop.permute.xlu2 %420 }
  0xab   :  { %v227_v15 = vmax.f32 %v182_v13, 0.0  ;;  %v228_v16 = vmax.f32 %v211_v14, 0.0 }
  0xad   :  { %376 = vmatmul.f32.gmra.mxu2 %v227_v15  ;;  %405 = vmatmul.f32.gmra.mxu3 %v228_v16 }
 0x10b   :  { %v310_v17 = vpop.f32.mrf.mxu0  ;;  %v339_v18 = vpop.f32.mrf.mxu1 }
 0x10c   :  { %v340_v40 = vadd.f32 %v339_v18, %v310_v17 }
 0x113   :  { %v313_v19 = vpop.f32.mrf.mxu0  ;;  %v342_v20 = vpop.f32.mrf.mxu1 }
 0x114   :  { %v343_v36 = vadd.f32 %v342_v20, %v313_v19 }
 0x118   :  { %v368_v21 = vpop.f32.mrf.mxu2  ;;  %v397_v22 = vpop.f32.mrf.mxu3 }
 0x119   :  { %v369_v43 = vadd.f32 %v368_v21, %v340_v40 }
 0x11b   :  { %v316_v26 = vpop.f32.mrf.mxu0  ;;  %v345_v27 = vpop.f32.mrf.mxu1  ;;  %v398_v46 = vadd.f32 %v397_v22, %v369_v43 }
 0x11c   :  { %v346_v33 = vadd.f32 %v345_v27, %v316_v26 }
 0x120   :  { %v371_v24 = vpop.f32.mrf.mxu2  ;;  %v400_v25 = vpop.f32.mrf.mxu3 }
 0x121   :  { %v372_v41 = vadd.f32 %v371_v24, %v343_v36 }
 0x123   :  { %v319_v31 = vpop.f32.mrf.mxu0  ;;  %v348_v32 = vpop.f32.mrf.mxu1  ;;  %v401_v45 = vadd.f32 %v400_v25, %v372_v41 }
 0x124   :  { %v349_v34 = vadd.f32 %v348_v32, %v319_v31 }
 0x128   :  { %v374_v29 = vpop.f32.mrf.mxu2  ;;  %v403_v30 = vpop.f32.mrf.mxu3 }
 0x129   :  { %v375_v37 = vadd.f32 %v374_v29, %v346_v33 }
 0x12b   :  { %v404_v44 = vadd.f32 %v403_v30, %v375_v37 }
 0x130   :  { %v377_v35 = vpop.f32.mrf.mxu2  ;;  %v406_v39 = vpop.f32.mrf.mxu3 }
 0x131   :  { %v378_v38 = vadd.f32 %v377_v35, %v349_v34 }
 0x133   :  { %v407_v42 = vadd.f32 %v406_v39, %v378_v38 }
 0x135   :  { %442 = vmatpush.msra.mxu0 %v407_v42  ;;  %483 = vmatpush.msra.mxu1 %v407_v42 }
 0x137   :  { %443 = vmatpush.msra.mxu0 %v404_v44  ;;  %484 = vmatpush.msra.mxu1 %v404_v44 }
 0x139   :  { %444 = vmatpush.msra.mxu0 %v401_v45  ;;  %485 = vmatpush.msra.mxu1 %v401_v45 }
 0x13b   :  { %445 = vmatpush.msra.mxu0 %v398_v46  ;;  %486 = vmatpush.msra.mxu1 %v398_v46 }
 0x13c   :  { %481 = vmatmul.msk.f32.vlgmr.msra.gmra.mxu0 %vm423_vm2, %v409_v47  ;;  %482 = vmatmul.msk.f32.vlgmr.msra.gmra.mxu1 %vm423_vm2, %v410_v48 }
 0x1b9   :  { %v447_v51 = vpop.f32.mrf.mxu0  ;;  %v450_v52 = vpop.f32.mrf.mxu1 }
 0x1ba   :  { %v448_v53 = vadd.f32 %v447_v51, %v416_v49  ;;  %v451_v54 = vadd.f32 %v450_v52, %v421_v50 }
 0x1bc   :  { %454 = vst.msk [vmem:[%s846_s6] sm:$0xff] %vm453_vm3, %v448_v53 }
 0x1bd   :  { %456 = vst.msk [vmem:[%s846_s6 + $0x8] sm:$0x3f] %vm455_vm4, %v451_v54 }

</bundles_post_ra>
